<compile_context>
chip_gen: v7x
topology: tpu7x:2x2x1
jax: 0.10.0
libtpu: 0.0.40
codegen_flags: <defaults>
</compile_context>

<pallas_src>
import math

import jax
import jax.numpy as jnp
from jax.experimental import pallas as pl
from jax.experimental.pallas import tpu as pltpu

_BN_EPS = 1e-5


# ---------------------------------------------------------------------------
# Fused whole-forward kernel: ONE matmul + bias + ReLU (both branches) + add
# ---------------------------------------------------------------------------
def _fused_kernel(x_ref, w_ref, b_ref, o_ref):
    """x_ref : (B, Cin*H*W)        flattened NCHW input
       w_ref : (Cin*H*W, 2*S*C)    [branch2 Toeplitz | branch1 5x5-composed, pre-broadcast]
       b_ref : (1, 2*S*C)          packed biases (same column order as w_ref)
       o_ref : (B, S*C)            column index = c_out*S + spatial  (NCHW-flat)
    """
    y = jnp.dot(x_ref[...], w_ref[...], preferred_element_type=jnp.float32)
    y = jnp.maximum(y + b_ref[...], 0.0)          # bias + ReLU for BOTH branches at once
    half = y.shape[1] // 2                        # static
    o_ref[...] = (y[:, :half] + y[:, half:]).astype(o_ref.dtype)


# ---------------------------------------------------------------------------
# Wrapper-side parameter folding (all parameter-only work, independent of x)
# ---------------------------------------------------------------------------
def _fold_bn(w, b, bn, eps=_BN_EPS):
    """Fold eval-mode BatchNorm2d (gamma, beta, mean, var) into conv (w, b)."""
    gamma, beta, mean, var = bn
    s = gamma / jnp.sqrt(var + eps)
    return w * s[:, None, None, None], (b - mean) * s + beta


def _layer_matrices(lp, Cin, H, W):
    """Build the packed (Cin*H*W, 2*S*C) weight and (1, 2*S*C) bias for one layer."""
    C = lp["w1a"].shape[0]
    Ho, Wo = H - 2, W - 2          # branch2 output spatial (3x3)
    S = Ho * Wo

    # Fold eval-mode BN into the first conv of each branch.
    w1a_f, b1a_f = _fold_bn(lp["w1a"], lp["b1a"], lp["bn1"])
    w2a_f, b2a_f = _fold_bn(lp["w2a"], lp["b2a"], lp["bn2"])

    # ---- branch 1: compose BN-folded conv1 with conv2 (no nonlinearity between)
    #      into one effective 5x5 VALID conv; its output is 1x1. ----
    w1b, b1b = lp["w1b"], lp["b1b"]
    w_eff = jnp.zeros((C, Cin, 5, 5), jnp.float32)
    for k2y in range(3):
        for k2x in range(3):
            contrib = jnp.einsum("om,mcyx->ocyx", w1b[:, :, k2y, k2x], w1a_f)
            w_eff = w_eff.at[:, :, k2y:k2y + 3, k2x:k2x + 3].add(contrib)
    b_eff = jnp.einsum("omyx,m->o", w1b, b1a_f) + b1b
    w1m = jnp.transpose(w_eff, (1, 2, 3, 0)).reshape(Cin * H * W, C)  # row = c*25+ky*5+kx
    # Pre-broadcast branch1 over the S output positions so the in-kernel branch add
    # is a plain lane add (no tile/repeat inside the kernel).
    w1_big = jnp.repeat(w1m, S, axis=1)                               # col = o*S + s
    b1_big = jnp.repeat(b_eff, S)

    # ---- branch 2: lower the 3x3 VALID conv (5x5 -> 3x3) into a Toeplitz-style
    #      weight over the flattened 5x5 input (column order = NCHW-flat output). ----
    w2_t = jnp.transpose(w2a_f, (1, 2, 3, 0))                         # (Cin, 3, 3, C)
    w2_6d = jnp.zeros((Cin, H, W, C, Ho, Wo), jnp.float32)
    for i in range(Ho):
        for j in range(Wo):
            w2_6d = w2_6d.at[:, i:i + 3, j:j + 3, :, i, j].set(w2_t)
    w2_big = w2_6d.reshape(Cin * H * W, C * S)                        # col = o*S + i*Wo + j
    b2_big = jnp.repeat(b2a_f, S)

    w_all = jnp.concatenate([w2_big, w1_big], axis=1)                 # (Cin*H*W, 2*S*C)
    b_all = jnp.concatenate([b2_big, b1_big]).reshape(1, 2 * S * C)
    return w_all, b_all, C, S


def _fused_layer(x, lp):
    B, Cin, H, W = x.shape
    if (H, W) != (5, 5):
        raise ValueError(
            f"conv2ds_after_resnet layer needs a 5x5 spatial input (got {H}x{W}): "
            "branch1 (two VALID 3x3 convs) must come out 1x1 for the '+' to "
            "broadcast -- the same shapes fail in PyTorch.")

    w_all, b_all, C, S = _layer_matrices(lp, Cin, H, W)

    x2d = x.reshape(B, Cin * H * W)           # contiguous NCHW -> free reshape
    out2d = pl.pallas_call(
        _fused_kernel,
        out_shape=jax.ShapeDtypeStruct((B, S * C), jnp.float32),
        in_specs=[pl.BlockSpec(memory_space=pltpu.MemorySpace.VMEM)] * 3,
        out_specs=pl.BlockSpec(memory_space=pltpu.MemorySpace.VMEM),
    )(x2d, w_all, b_all)

    # Column order is already c_out-major (NCHW-flat) -> free reshape, no transpose.
    return out2d.reshape(B, C, H - 2, W - 2)


def conv2ds_after_resnet_forward(x, params):
    # Only one layer can ever be shape-valid, so this loop is a single fused
    # pallas_call for the whole forward; extra layers raise exactly like PyTorch.
    out = x
    for lp in params:
        out = _fused_layer(out, lp)
    return out


# ---------------------------------------------------------------------------
# Deterministic parameters (PyTorch layouts) and a pure-JAX reference
# ---------------------------------------------------------------------------
def init_params(in_dim, out_dim, key):
    params = []
    for k in range(in_dim, out_dim):
        cin, cout = k, k + 1
        key, *ks = jax.random.split(key, 15)

        def uni(kk, shape, fan_in):
            bound = 1.0 / math.sqrt(fan_in)
            return jax.random.uniform(kk, shape, jnp.float32, -bound, bound)

        params.append(dict(
            w1a=uni(ks[0], (cout, cin, 3, 3), cin * 9),
            b1a=uni(ks[1], (cout,), cin * 9),
            w1b=uni(ks[2], (cout, cout, 3, 3), cout * 9),
            b1b=uni(ks[3], (cout,), cout * 9),
            w2a=uni(ks[4], (cout, cin, 3, 3), cin * 9),
            b2a=uni(ks[5], (cout,), cin * 9),
            # (gamma, beta, running_mean, running_var)
            bn1=(jax.random.uniform(ks[6], (cout,), jnp.float32, 0.5, 1.5),
                 jax.random.uniform(ks[7], (cout,), jnp.float32, -0.5, 0.5),
                 jax.random.uniform(ks[8], (cout,), jnp.float32, -0.5, 0.5),
                 jax.random.uniform(ks[9], (cout,), jnp.float32, 0.5, 1.5)),
            bn2=(jax.random.uniform(ks[10], (cout,), jnp.float32, 0.5, 1.5),
                 jax.random.uniform(ks[11], (cout,), jnp.float32, -0.5, 0.5),
                 jax.random.uniform(ks[12], (cout,), jnp.float32, -0.5, 0.5),
                 jax.random.uniform(ks[13], (cout,), jnp.float32, 0.5, 1.5)),
        ))
    return params


def _conv_ref(x, w, b):
    y = jax.lax.conv_general_dilated(
        x, w, window_strides=(1, 1), padding="VALID",
        dimension_numbers=("NCHW", "OIHW", "NCHW"))
    return y + b.reshape(1, -1, 1, 1)


def _bn_ref(x, bn, eps=_BN_EPS):
    gamma, beta, mean, var = bn
    s = gamma / jnp.sqrt(var + eps)
    return x * s.reshape(1, -1, 1, 1) + (beta - mean * s).reshape(1, -1, 1, 1)


def reference_forward(x, params):
    out = x
    for lp in params:
        b1 = _conv_ref(out, lp["w1a"], lp["b1a"])
        b1 = _bn_ref(b1, lp["bn1"])
        b1 = _conv_ref(b1, lp["w1b"], lp["b1b"])
        b1 = jnp.maximum(b1, 0.0)
        b2 = _conv_ref(out, lp["w2a"], lp["b2a"])
        b2 = _bn_ref(b2, lp["bn2"])
        b2 = jnp.maximum(b2, 0.0)
        out = b1 + b2
    return out


if __name__ == "__main__":
    # conv2ds_after_resnet(in_dim=4, out_dim=5): one (layers, layers2) pair, 4->5 ch.
    # 5x5 spatial input is the only size for which the module's forward is shape-valid.
    in_dim, out_dim = 4, 5
    B, H, W = 2, 5, 5

    key = jax.random.PRNGKey(0)
    key, kx = jax.random.split(key)
    x = jax.random.normal(kx, (B, in_dim, H, W), dtype=jnp.float32)
    params = init_params(in_dim, out_dim, key)

    fwd = jax.jit(conv2ds_after_resnet_forward)
    out = fwd(x, params)
    jax.block_until_ready(out)

    ref = reference_forward(x, params)
    assert out.shape == ref.shape == (B, out_dim, H - 2, W - 2)
    if not jnp.allclose(out, ref, atol=1e-4, rtol=1e-4):
        err = float(jnp.max(jnp.abs(out - ref)))
        raise AssertionError(f"kernel/reference mismatch, max abs err = {err}")
    print("KERNEL_OK")
</pallas_src>

<mosaic_0001>
module attributes {stable_mosaic.version = 11 : i64} {
  func.func @_fused_kernel(%arg0: memref<2x100xf32, #tpu.memory_space<vmem>>, %arg1: memref<100x90xf32, #tpu.memory_space<vmem>>, %arg2: memref<1x90xf32, #tpu.memory_space<vmem>>, %arg3: memref<2x45xf32, #tpu.memory_space<vmem>>) attributes {dimension_semantics = [], scalar_prefetch = 0 : i64, scratch_operands = 0 : i64, tpu.core_type = #tpu.core_type<tc>} {
    %c0 = arith.constant 0 : index
    %c0_0 = arith.constant 0 : index
    %0 = vector.load %arg0[%c0, %c0_0] : memref<2x100xf32, #tpu.memory_space<vmem>>, vector<2x100xf32>
    %c0_1 = arith.constant 0 : index
    %c0_2 = arith.constant 0 : index
    %1 = vector.load %arg1[%c0_1, %c0_2] : memref<100x90xf32, #tpu.memory_space<vmem>>, vector<100x90xf32>
    %cst = arith.constant dense<0.000000e+00> : vector<2x90xf32>
    %2 = tpu.matmul %0, %1, %cst {dimension_numbers = #tpu.dot_dimension_numbers<[1], [0], [0], [1], [0, 0, 1, 1], [], []>} : vector<2x100xf32>, vector<100x90xf32>, vector<2x90xf32> -> vector<2x90xf32>
    %c0_3 = arith.constant 0 : index
    %c0_4 = arith.constant 0 : index
    %3 = vector.load %arg2[%c0_3, %c0_4] : memref<1x90xf32, #tpu.memory_space<vmem>>, vector<1x90xf32>
    %4 = vector.broadcast %3 : vector<1x90xf32> to vector<2x90xf32>
    %5 = arith.addf %2, %4 : vector<2x90xf32>
    %cst_5 = arith.constant 0.000000e+00 : f32
    %6 = vector.broadcast %cst_5 : f32 to vector<2x90xf32>
    %7 = arith.maximumf %5, %6 : vector<2x90xf32>
    %8 = vector.extract_strided_slice %7 {offsets = [0, 0], sizes = [2, 45], strides = [1, 1]} : vector<2x90xf32> to vector<2x45xf32>
    %9 = vector.extract_strided_slice %7 {offsets = [0, 45], sizes = [2, 45], strides = [1, 1]} : vector<2x90xf32> to vector<2x45xf32>
    %10 = arith.addf %8, %9 : vector<2x45xf32>
    %c0_6 = arith.constant 0 : index
    %c0_7 = arith.constant 0 : index
    %11 = vector.load %arg3[%c0_6, %c0_7] : memref<2x45xf32, #tpu.memory_space<vmem>>, vector<2x45xf32>
    tpu.vector_store %arg3[%c0_6, %c0_7], %10 {strides = array<i32>} : memref<2x45xf32, #tpu.memory_space<vmem>>, vector<2x45xf32>,
    return
  }
}

</mosaic_0001>

<bundles_post_ra>
// kernel: conv2ds_after_resnet_forward.1
= control target key start
LH: loop header
LB: loop body
LE: loop exit
PB: predicated region body
PF: predicated region fallthrough
CT: control target
= control target key end

     0   :  { %v193_v0 = vmov 0.0|0.0   ;;  %vm194_vm0 = vmmov 0   ;;  %v195_v4 = vmov 0.0   ;;  %vm39_vm1 = vcmask 1043456   ;;  %s196_s15 = smov 83   ;;  %s265_s1 = inlined_call_operand.vmem [shape: f32[100,90], index: 1, kind: input, shape index: {}]   ;;  %s266_s0 = inlined_call_operand.vmem [shape: f32[2,100], index: 0, kind: input, shape index: {}]   ;;  %s267_s2 = inlined_call_operand.vmem [shape: f32[1,90], index: 2, kind: input, shape index: {}]   ;;  %s268_s3 = inlined_call_operand.vmem [shape: f32[2,45], index: 3, kind: output, shape index: {}]  }
   0x1   :  { %171 = vmatprep.subr.bf16.mxu0 %v193_v0  ;;  %v15_v1 = vld [vmem:[%s265_s1] sm:$0xff]  ;;  %v16_v2 = vld [vmem:[%s265_s1 + $0x8] sm:$0xff]  ;;  %v17_v3 = vld [vmem:[%s265_s1 + $0x10] sm:$0xff]  ;;  %168 = vmatprep.mubr.msk.f32.mxu0 %vm194_vm0, %v195_v4  ;;  %vm35_vm2 = vcmask 818176   ;;  %vm119_vm3 = vcmask 361472  }
   0x2   :  { %v172_v5 = vpack.c.bf16 %v16_v2, %v15_v1  ;;  %v18_v6 = vld [vmem:[%s265_s1 + $0x18] sm:$0xff]  ;;  %v19_v8 = vld [vmem:[%s265_s1 + $0x20] sm:$0xff]  ;;  %v20_v9 = vld [vmem:[%s265_s1 + $0x28] sm:$0xff] }
   0x3   :  { %v175_v7 = vpack.c.bf16 %v18_v6, %v17_v3  ;;  %v178_v10 = vpack.c.bf16 %v20_v9, %v19_v8  ;;  %v21_v11 = vld [vmem:[%s265_s1 + $0x30] sm:$0xff]  ;;  %v22_v12 = vld [vmem:[%s265_s1 + $0x38] sm:$0xff]  ;;  %v23_v14 = vld [vmem:[%s265_s1 + $0x40] sm:$0xff] }
   0x4   :  { %173 = vmatpush3.bf16.msra.mxu0 %v172_v5  ;;  %v181_v13 = vpack.c.bf16 %v22_v12, %v21_v11  ;;  %v24_v15 = vld [vmem:[%s265_s1 + $0x48] sm:$0xff]  ;;  %v25_v17 = vld [vmem:[%s265_s1 + $0x50] sm:$0xff]  ;;  %v26_v18 = vld [vmem:[%s265_s1 + $0x58] sm:$0xff] }
   0x5   :  { %174 = vmatprep.subr.bf16.mxu0 %v193_v0  ;;  %v184_v16 = vpack.c.bf16 %v24_v15, %v23_v14  ;;  %v187_v19 = vpack.c.bf16 %v26_v18, %v25_v17  ;;  %v27_v20 = vld [vmem:[%s265_s1 + $0x60] sm:$0xf] }
   0x6   :  { %v14_v21 = vld [vmem:[%s266_s0] sm:$0x3] }
   0x7   :  { %v125_v22 = vld [vmem:[%s267_s2] ss:$0 sm:$0xff] }
   0x8   :  { %176 = vmatpush3.bf16.msra.mxu0 %v175_v7 }
   0x9   :  { %177 = vmatprep.subr.bf16.mxu0 %v193_v0 }
   0xc   :  { %179 = vmatpush3.bf16.msra.mxu0 %v178_v10 }
   0xd   :  { %180 = vmatprep.subr.bf16.mxu0 %v193_v0 }
  0x10   :  { %182 = vmatpush3.bf16.msra.mxu0 %v181_v13 }
  0x11   :  { %183 = vmatprep.subr.bf16.mxu0 %v193_v0 }
  0x14   :  { %185 = vmatpush3.bf16.msra.mxu0 %v184_v16 }
  0x15   :  { %186 = vmatprep.subr.bf16.mxu0 %v193_v0 }
  0x18   :  { %188 = vmatpush3.bf16.msra.mxu0 %v187_v19 }
  0x19   :  { %166 = vmatprep.subr.mxu0 %v195_v4 }
  0x1c   :  { %167 = vmatpush3.msk.msra.mxu0 %vm39_vm1, %v27_v20 }
  0x1d   :  { %169 = vmatmul.mubr.msk.f32.vlgmr.msra.gmra.mrb[0].mxu0 %vm35_vm2, %v14_v21 }
  0xf0   :  { %v109_v23 = vpop.f32.mrb[0].mxu0 }
  0xf1   :  { %v110_v24 = vadd.f32 %v125_v22, %v109_v23  ;;  %v170_v25 = vpop.f32.mrb[1].mxu0 }
  0xf3   :  { %v113_v26 = vmax.f32 %v110_v24, 0.0 }
  0xf5   :  { %115 = vrot.lane.b32.xlu0 %v113_v26, %s196_s15 }
 0x167   :  { %v116_v27 = vpop.permute.xlu0 %115 }
 0x168   :  { %v118_v28 = vadd.f32 %v116_v27, %v113_v26 }
 0x16a   :  { %120 = vst.msk [vmem:[%s268_s3] sm:$0x3] %vm119_vm3, %v118_v28 }

</bundles_post_ra>
